<compile_context>
chip_gen: v5e
topology: v5e:2x2
jax: 0.10.0
libtpu: 0.0.40
codegen_flags: <defaults>
</compile_context>

<pallas_src>
import functools

import jax
import jax.numpy as jnp
from jax import lax
from jax.experimental import pallas as pl
from jax.experimental.pallas import tpu as pltpu


_LANES = 128
_TRIPLE = 3 * _LANES   # 384: three interleaved triple-phases per 128 weights


def _wsq_kernel(c_ref, o_ref, w_ref, s_ref, acc_ref, *,
                part_steps, block_rows, valid_rows):
    """One grid step: acc += visweight * per-triple squared-error sum."""
    p = pl.program_id(0)          # TensorCore partition ("parallel")
    i = pl.program_id(1)          # streaming step over rows ("arbitrary")

    @pl.when(i == 0)
    def _init():
        acc_ref[...] = jnp.zeros_like(acc_ref)

    # Upcast in VMEM (no-op for f32 inputs, halves HBM bytes for bf16 inputs).
    d = c_ref[...].astype(jnp.float32) - o_ref[...].astype(jnp.float32)
    sq = d * d                                          # (block_rows, 384)

    # Per-triple sum via MXU selection matmul on the contiguous layout:
    #   tri[r, j] = sum_p sq[r, 3j + p]
    # The 0/1 selector is exact in bf16; splitting sq into three bf16 limbs and
    # accumulating the three native bf16 MXU passes in f32 reproduces the f32
    # result to ~2^-26 relative error (independent of default f32 matmul
    # precision).  All products are value*1.0 or value*0.0, i.e. exact.
    sel = s_ref[...]                                    # (384, 128) bf16 0/1
    hi = sq.astype(jnp.bfloat16)
    r1 = sq - hi.astype(jnp.float32)
    mid = r1.astype(jnp.bfloat16)
    lo = (r1 - mid.astype(jnp.float32)).astype(jnp.bfloat16)
    tri = (jnp.dot(hi, sel, preferred_element_type=jnp.float32)
           + jnp.dot(mid, sel, preferred_element_type=jnp.float32)
           + jnp.dot(lo, sel, preferred_element_type=jnp.float32))

    contrib = w_ref[...].astype(jnp.float32) * tri      # (block_rows, 128)

    blk = p * part_steps + i                  # true (unclamped) block id
    needs_mask = (blk + 1) * block_rows > valid_rows

    @pl.when(jnp.logical_not(needs_mask))
    def _interior():                          # hot path: pure VPU accumulate
        acc_ref[...] += contrib

    @pl.when(needs_mask)
    def _tail():                              # ragged tail / clamped duplicate
        row_ids = blk * block_rows + lax.broadcasted_iota(
            jnp.int32, contrib.shape, 0)
        # Keep this a select (not a multiply) so garbage/NaN rows cannot leak.
        acc_ref[...] += jnp.where(row_ids < valid_rows, contrib, 0.0)


def _tpu_config():
    """(num_parallel_parts, max_block_rows) from the local device kind."""
    try:
        kind = jax.devices()[0].device_kind.lower()
    except Exception:
        return 1, 1024
    two_cores = any(s in kind for s in ("v7", "v4", "v5p"))   # 2 TCs per device
    big_blocks = ("v6" in kind) or ("v7" in kind)
    return (2 if two_cores else 1), (2048 if big_blocks else 1024)


def _weighted_sq_sum(c2, o2, w2, sel, *, rows, block_rows, num_parts):
    nblocks = -(-rows // block_rows)
    part_steps = -(-nblocks // num_parts)

    def row_block(p, i):
        # Clamp so the DMA never targets a block fully past the array end; the
        # in-kernel tail mask discards duplicated / out-of-range rows.
        return jnp.minimum(p * part_steps + i, nblocks - 1)

    kernel = functools.partial(
        _wsq_kernel, part_steps=part_steps, block_rows=block_rows,
        valid_rows=rows)

    bytes_accessed = int(
        c2.size * jnp.dtype(c2.dtype).itemsize
        + o2.size * jnp.dtype(o2.dtype).itemsize
        + w2.size * jnp.dtype(w2.dtype).itemsize
        + sel.size * 2
        + num_parts * block_rows * _LANES * 4)
    cost = pl.CostEstimate(flops=8 * rows * _LANES, transcendentals=0,
                           bytes_accessed=bytes_accessed)

    partial_sums = pl.pallas_call(
        kernel,
        out_shape=jax.ShapeDtypeStruct((num_parts, block_rows, _LANES),
                                       jnp.float32),
        grid=(num_parts, part_steps),
        in_specs=[
            pl.BlockSpec((block_rows, _TRIPLE), lambda p, i: (row_block(p, i), 0)),
            pl.BlockSpec((block_rows, _TRIPLE), lambda p, i: (row_block(p, i), 0)),
            pl.BlockSpec((block_rows, _LANES), lambda p, i: (row_block(p, i), 0)),
            # Constant index_map -> the 96 KiB selector stays VMEM-resident.
            pl.BlockSpec((_TRIPLE, _LANES), lambda p, i: (0, 0)),
        ],
        out_specs=pl.BlockSpec((None, block_rows, _LANES), lambda p, i: (p, 0, 0)),
        compiler_params=pltpu.CompilerParams(
            dimension_semantics=("parallel", "arbitrary"),
            vmem_limit_bytes=64 * 1024 * 1024,
        ),
        cost_estimate=cost,
    )(c2, o2, w2, sel)
    return jnp.sum(partial_sums)


@jax.jit
def pos_mse(output, convdata, visweight):
    # Channel slice flattened row-major (matches torch contiguity for the
    # reshape(-1, 3) triple grouping).  No transpose, no pre-cast.
    # NOTE: when C > 3 this slice is one copy pass; selecting channels via the
    # BlockSpec would need the 5D layout and is not worth the complexity here.
    c_flat = convdata[:, :, 0:3, :, :].reshape(-1)
    o_flat = output[:, :, 0:3, :, :].reshape(-1)
    w_flat = visweight.reshape(-1)

    n = w_flat.shape[0]                   # number of weights == number of triples
    rows = -(-n // _LANES)
    pad = rows * _LANES - n
    if pad:
        # Minimal padding only (to a 128-triple boundary); padded weights and
        # errors are zero, so the tail contributes nothing.
        w_flat = jnp.pad(w_flat, (0, pad))
        c_flat = jnp.pad(c_flat, (0, 3 * pad))
        o_flat = jnp.pad(o_flat, (0, 3 * pad))

    # Contiguous lane-dense layout (free reshape): element (r, 3*j + p) is
    # phase p of triple 128*r + j, matching weight w2[r, j].
    c2 = c_flat.reshape(rows, _TRIPLE)
    o2 = o_flat.reshape(rows, _TRIPLE)
    w2 = w_flat.reshape(rows, _LANES)

    # 0/1 selection matrix: S[3*j + p, j] = 1, so (sq @ S)[r, j] is the
    # per-triple squared-error sum.  Exactly representable in bf16.
    sel = (lax.broadcasted_iota(jnp.int32, (_TRIPLE, _LANES), 0) // 3
           == lax.broadcasted_iota(jnp.int32, (_TRIPLE, _LANES), 1)
           ).astype(jnp.bfloat16)

    num_cores, max_block_rows = _tpu_config()
    block_rows = rows if rows < max_block_rows else max_block_rows
    nblocks = -(-rows // block_rows)
    num_parts = num_cores if (num_cores > 1 and nblocks >= 2) else 1

    loss = _weighted_sq_sum(c2, o2, w2, sel, rows=rows,
                            block_rows=block_rows, num_parts=num_parts)
    return loss / 1024.0


if __name__ == "__main__":
    key = jax.random.PRNGKey(0)
    k1, k2, k3 = jax.random.split(key, 3)

    B, T, C, H, W = 2, 2, 4, 16, 16
    output = jax.random.normal(k1, (B, T, C, H, W), dtype=jnp.float32)
    convdata = jax.random.normal(k2, (B, T, C, H, W), dtype=jnp.float32)
    visweight = jax.random.uniform(k3, (B, T, H, W), dtype=jnp.float32)

    loss = pos_mse(output, convdata, visweight)
    loss = jax.block_until_ready(loss)

    # Pure-JAX reference mirroring the PyTorch computation exactly
    # (elementwise form of vw.reshape(1,-1).mm(e_sq.reshape(-1,3)).sum()).
    e_sq = jnp.square(convdata[:, :, 0:3] - output[:, :, 0:3]).reshape(-1, 3)
    ref = jnp.sum(visweight.reshape(-1) * e_sq.sum(axis=1)) / 1024.0

    assert jnp.allclose(loss, ref, rtol=1e-5, atol=1e-5), (loss, ref)
    print("KERNEL_OK")
</pallas_src>

<mosaic_0001>
module attributes {stable_mosaic.version = 11 : i64} {
  func.func @_wsq_kernel(%arg0: i32, %arg1: i32, %arg2: memref<8x384xf32, #tpu.memory_space<vmem>>, %arg3: memref<8x384xf32, #tpu.memory_space<vmem>>, %arg4: memref<8x128xf32, #tpu.memory_space<vmem>>, %arg5: memref<384x128xbf16, #tpu.memory_space<vmem>>, %arg6: memref<1x8x128xf32, #tpu.memory_space<vmem>>) attributes {dimension_semantics = [#tpu.dimension_semantics<parallel>, #tpu.dimension_semantics<arbitrary>], iteration_bounds = array<i64: 1, 1>, scalar_prefetch = 0 : i64, scratch_operands = 0 : i64, tpu.core_type = #tpu.core_type<tc>, window_params = [{transform_indices = @transform_0, window_bounds = array<i64: 8, 384>}, {transform_indices = @transform_1, window_bounds = array<i64: 8, 384>}, {transform_indices = @transform_2, window_bounds = array<i64: 8, 128>}, {pipeline_mode = #tpu.pipeline_mode<synchronous>, transform_indices = @transform_3, window_bounds = array<i64: 384, 128>}, {transform_indices = @transform_4, window_bounds = array<i64: 1, 8, 128>}]} {
    %c0_i32 = arith.constant 0 : i32
    %0 = arith.cmpi eq, %arg1, %c0_i32 : i32
    %1 = arith.extui %0 : i1 to i32
    %c0_i32_0 = arith.constant 0 : i32
    %2 = arith.cmpi ne, %1, %c0_i32_0 : i32
    scf.if %2 {
      %cst_14 = arith.constant 0.000000e+00 : f32
      %32 = vector.broadcast %cst_14 : f32 to vector<8x128xf32>
      %c0_15 = arith.constant 0 : index
      %c0_16 = arith.constant 0 : index
      %c0_17 = arith.constant 0 : index
      %33 = vector.load %arg6[%c0_15, %c0_16, %c0_17] : memref<1x8x128xf32, #tpu.memory_space<vmem>>, vector<1x8x128xf32>
      %34 = vector.shape_cast %33 : vector<1x8x128xf32> to vector<8x128xf32>
      %35 = vector.shape_cast %32 : vector<8x128xf32> to vector<1x8x128xf32>
      tpu.vector_store %arg6[%c0_15, %c0_16, %c0_17], %35 {strides = array<i32>} : memref<1x8x128xf32, #tpu.memory_space<vmem>>, vector<1x8x128xf32>,
    } else {
    }
    %c0 = arith.constant 0 : index
    %c0_1 = arith.constant 0 : index
    %3 = vector.load %arg2[%c0, %c0_1] : memref<8x384xf32, #tpu.memory_space<vmem>>, vector<8x384xf32>
    %c0_2 = arith.constant 0 : index
    %c0_3 = arith.constant 0 : index
    %4 = vector.load %arg3[%c0_2, %c0_3] : memref<8x384xf32, #tpu.memory_space<vmem>>, vector<8x384xf32>
    %5 = arith.subf %3, %4 : vector<8x384xf32>
    %6 = arith.mulf %5, %5 : vector<8x384xf32>
    %c0_4 = arith.constant 0 : index
    %c0_5 = arith.constant 0 : index
    %7 = vector.load %arg5[%c0_4, %c0_5] : memref<384x128xbf16, #tpu.memory_space<vmem>>, vector<384x128xbf16>
    %8 = arith.truncf %6 : vector<8x384xf32> to vector<8x384xbf16>
    %9 = arith.extf %8 : vector<8x384xbf16> to vector<8x384xf32>
    %10 = arith.subf %6, %9 : vector<8x384xf32>
    %11 = arith.truncf %10 : vector<8x384xf32> to vector<8x384xbf16>
    %12 = arith.extf %11 : vector<8x384xbf16> to vector<8x384xf32>
    %13 = arith.subf %10, %12 : vector<8x384xf32>
    %14 = arith.truncf %13 : vector<8x384xf32> to vector<8x384xbf16>
    %cst = arith.constant dense<0.000000e+00> : vector<8x128xf32>
    %15 = tpu.matmul %8, %7, %cst {dimension_numbers = #tpu.dot_dimension_numbers<[1], [0], [0], [1], [0, 0, 1, 1], [], []>} : vector<8x384xbf16>, vector<384x128xbf16>, vector<8x128xf32> -> vector<8x128xf32>
    %cst_6 = arith.constant dense<0.000000e+00> : vector<8x128xf32>
    %16 = tpu.matmul %11, %7, %cst_6 {dimension_numbers = #tpu.dot_dimension_numbers<[1], [0], [0], [1], [0, 0, 1, 1], [], []>} : vector<8x384xbf16>, vector<384x128xbf16>, vector<8x128xf32> -> vector<8x128xf32>
    %17 = arith.addf %15, %16 : vector<8x128xf32>
    %cst_7 = arith.constant dense<0.000000e+00> : vector<8x128xf32>
    %18 = tpu.matmul %14, %7, %cst_7 {dimension_numbers = #tpu.dot_dimension_numbers<[1], [0], [0], [1], [0, 0, 1, 1], [], []>} : vector<8x384xbf16>, vector<384x128xbf16>, vector<8x128xf32> -> vector<8x128xf32>
    %19 = arith.addf %17, %18 : vector<8x128xf32>
    %c0_8 = arith.constant 0 : index
    %c0_9 = arith.constant 0 : index
    %20 = vector.load %arg4[%c0_8, %c0_9] : memref<8x128xf32, #tpu.memory_space<vmem>>, vector<8x128xf32>
    %21 = arith.mulf %20, %19 : vector<8x128xf32>
    %c1_i32 = arith.constant 1 : i32
    %22 = arith.muli %arg0, %c1_i32 : i32
    %23 = arith.addi %22, %arg1 : i32
    %c1_i32_10 = arith.constant 1 : i32
    %24 = arith.addi %23, %c1_i32_10 : i32
    %c8_i32 = arith.constant 8 : i32
    %25 = arith.muli %24, %c8_i32 : i32
    %c8_i32_11 = arith.constant 8 : i32
    %26 = arith.cmpi sgt, %25, %c8_i32_11 : i32
    %true = arith.constant true
    %27 = arith.xori %26, %true : i1
    %28 = arith.extui %27 : i1 to i32
    %c0_i32_12 = arith.constant 0 : i32
    %29 = arith.cmpi ne, %28, %c0_i32_12 : i32
    scf.if %29 {
      %c0_14 = arith.constant 0 : index
      %c0_15 = arith.constant 0 : index
      %c0_16 = arith.constant 0 : index
      %32 = vector.load %arg6[%c0_14, %c0_15, %c0_16] : memref<1x8x128xf32, #tpu.memory_space<vmem>>, vector<1x8x128xf32>
      %33 = vector.shape_cast %32 : vector<1x8x128xf32> to vector<8x128xf32>
      %34 = arith.addf %33, %21 : vector<8x128xf32>
      %c0_17 = arith.constant 0 : index
      %c0_18 = arith.constant 0 : index
      %c0_19 = arith.constant 0 : index
      %35 = vector.load %arg6[%c0_17, %c0_18, %c0_19] : memref<1x8x128xf32, #tpu.memory_space<vmem>>, vector<1x8x128xf32>
      %36 = vector.shape_cast %35 : vector<1x8x128xf32> to vector<8x128xf32>
      %37 = vector.shape_cast %34 : vector<8x128xf32> to vector<1x8x128xf32>
      tpu.vector_store %arg6[%c0_17, %c0_18, %c0_19], %37 {strides = array<i32>} : memref<1x8x128xf32, #tpu.memory_space<vmem>>, vector<1x8x128xf32>,
    } else {
    }
    %30 = arith.extui %26 : i1 to i32
    %c0_i32_13 = arith.constant 0 : i32
    %31 = arith.cmpi ne, %30, %c0_i32_13 : i32
    scf.if %31 {
      %c8_i32_14 = arith.constant 8 : i32
      %32 = arith.muli %23, %c8_i32_14 : i32
      %33 = tpu.iota {dimensions = array<i32: 0>} : vector<8x128xi32>
      %34 = vector.broadcast %32 : i32 to vector<8x128xi32>
      %35 = arith.addi %34, %33 : vector<8x128xi32>
      %c0_15 = arith.constant 0 : index
      %c0_16 = arith.constant 0 : index
      %c0_17 = arith.constant 0 : index
      %36 = vector.load %arg6[%c0_15, %c0_16, %c0_17] : memref<1x8x128xf32, #tpu.memory_space<vmem>>, vector<1x8x128xf32>
      %37 = vector.shape_cast %36 : vector<1x8x128xf32> to vector<8x128xf32>
      %c8_i32_18 = arith.constant 8 : i32
      %38 = vector.broadcast %c8_i32_18 : i32 to vector<8x128xi32>
      %39 = arith.cmpi slt, %35, %38 : vector<8x128xi32>
      %cst_19 = arith.constant 0.000000e+00 : f32
      %40 = vector.broadcast %cst_19 : f32 to vector<8x128xf32>
      %41 = arith.select %39, %21, %40 : vector<8x128xi1>, vector<8x128xf32>
      %42 = arith.addf %37, %41 : vector<8x128xf32>
      %c0_20 = arith.constant 0 : index
      %c0_21 = arith.constant 0 : index
      %c0_22 = arith.constant 0 : index
      %43 = vector.load %arg6[%c0_20, %c0_21, %c0_22] : memref<1x8x128xf32, #tpu.memory_space<vmem>>, vector<1x8x128xf32>
      %44 = vector.shape_cast %43 : vector<1x8x128xf32> to vector<8x128xf32>
      %45 = vector.shape_cast %42 : vector<8x128xf32> to vector<1x8x128xf32>
      tpu.vector_store %arg6[%c0_20, %c0_21, %c0_22], %45 {strides = array<i32>} : memref<1x8x128xf32, #tpu.memory_space<vmem>>, vector<1x8x128xf32>,
    } else {
    }
    return
  }
  func.func @transform_0(%arg0: i32, %arg1: i32) -> (i32, i32) {
    %c1_i32 = arith.constant 1 : i32
    %0 = arith.muli %arg0, %c1_i32 : i32
    %1 = arith.addi %0, %arg1 : i32
    %c0_i32 = arith.constant 0 : i32
    %2 = arith.minsi %1, %c0_i32 : i32
    %c0_i32_0 = arith.constant 0 : i32
    %c0_i32_1 = arith.constant 0 : i32
    return %2, %c0_i32_0 : i32, i32
  }
  func.func @transform_1(%arg0: i32, %arg1: i32) -> (i32, i32) {
    %c1_i32 = arith.constant 1 : i32
    %0 = arith.muli %arg0, %c1_i32 : i32
    %1 = arith.addi %0, %arg1 : i32
    %c0_i32 = arith.constant 0 : i32
    %2 = arith.minsi %1, %c0_i32 : i32
    %c0_i32_0 = arith.constant 0 : i32
    %c0_i32_1 = arith.constant 0 : i32
    return %2, %c0_i32_0 : i32, i32
  }
  func.func @transform_2(%arg0: i32, %arg1: i32) -> (i32, i32) {
    %c1_i32 = arith.constant 1 : i32
    %0 = arith.muli %arg0, %c1_i32 : i32
    %1 = arith.addi %0, %arg1 : i32
    %c0_i32 = arith.constant 0 : i32
    %2 = arith.minsi %1, %c0_i32 : i32
    %c0_i32_0 = arith.constant 0 : i32
    %c0_i32_1 = arith.constant 0 : i32
    return %2, %c0_i32_0 : i32, i32
  }
  func.func @transform_3(%arg0: i32, %arg1: i32) -> (i32, i32) {
    %c0_i32 = arith.constant 0 : i32
    %c0_i32_0 = arith.constant 0 : i32
    %c0_i32_1 = arith.constant 0 : i32
    return %c0_i32, %c0_i32_0 : i32, i32
  }
  func.func @transform_4(%arg0: i32, %arg1: i32) -> (i32, i32, i32) {
    %c0_i32 = arith.constant 0 : i32
    %c0_i32_0 = arith.constant 0 : i32
    %c0_i32_1 = arith.constant 0 : i32
    return %arg0, %c0_i32, %c0_i32_0 : i32, i32, i32
  }
}

</mosaic_0001>

<bundles_post_ra>
// kernel: pos_mse.1
= control target key start
LH: loop header
LB: loop body
LE: loop exit
PB: predicated region body
PF: predicated region fallthrough
CT: control target
= control target key end

     0   :  { %s884_s3 = inlined_call_operand.vmem [shape: bf16[384,128], index: 3, kind: input, shape index: {}]   ;;  %s885_s0 = inlined_call_operand.vmem [shape: f32[8,384], index: 0, kind: input, shape index: {}]   ;;  %s886_s1 = inlined_call_operand.vmem [shape: f32[8,384], index: 1, kind: input, shape index: {}]   ;;  %s887_s2 = inlined_call_operand.vmem [shape: f32[8,128], index: 2, kind: input, shape index: {}]   ;;  %s888_s4 = inlined_call_operand.vmem [shape: f32[1,8,128], index: 4, kind: output, shape index: {}]  }
   0x1   :  { %v669_v0 = vld [vmem:[%s884_s3 + $0x38] sm:$0xff]  ;;  %v680_v2 = vld [vmem:[%s884_s3 + $0x30] sm:$0xff]  ;;  %v704_v6 = vld [vmem:[%s884_s3 + $0x28] sm:$0xff] }
   0x2   :  { %v674_v1 = vld [vmem:[%s884_s3 + $0x78] sm:$0xff]  ;;  %343 = vmatpush.bf16.msra.mxu0 %v669_v0  ;;  %v686_v3 = vld [vmem:[%s884_s3 + $0x70] sm:$0xff]  ;;  %393 = vmatpush.bf16.msra.mxu3 %v669_v0  ;;  %v710_v7 = vld [vmem:[%s884_s3 + $0x68] sm:$0xff] }
   0x3   :  { %356 = vmatpush.bf16.msra.mxu1 %v674_v1  ;;  %v691_v4 = vld [vmem:[%s884_s3 + $0xb8] sm:$0xff]  ;;  %v698_v5 = vld [vmem:[%s884_s3 + $0xb0] sm:$0xff]  ;;  %v716_v8 = vld [vmem:[%s884_s3 + $0xa8] sm:$0xff] }
   0x4   :  { %369 = vmatpush.bf16.msra.mxu2 %v691_v4  ;;  %v109_v9 = vld [vmem:[%s885_s0] sm:$0xff]  ;;  %v110_v10 = vld [vmem:[%s885_s0 + $0x8] sm:$0xff]  ;;  %v111_v14 = vld [vmem:[%s885_s0 + $0x10] sm:$0xff] }
   0x5   :  { %v112_v11 = vld [vmem:[%s886_s1] sm:$0xff]  ;;  %v113_v12 = vld [vmem:[%s886_s1 + $0x8] sm:$0xff]  ;;  %v114_v15 = vld [vmem:[%s886_s1 + $0x10] sm:$0xff] }
   0x6   :  { %344 = vmatpush.bf16.msra.mxu0 %v680_v2  ;;  %394 = vmatpush.bf16.msra.mxu3 %v680_v2  ;;  %v115_v13 = vsub.f32 %v109_v9, %v112_v11  ;;  %v741_v16 = vld [vmem:[%s884_s3 + $0x20] sm:$0xff]  ;;  %v116_v18 = vsub.f32 %v110_v10, %v113_v12  ;;  %v117_v19 = vsub.f32 %v111_v14, %v114_v15  ;;  %v760_v24 = vld [vmem:[%s884_s3 + $0x18] sm:$0xff]  ;;  %v786_v32 = vld [vmem:[%s884_s3 + $0x10] sm:$0xff] }
   0x7   :  { %357 = vmatpush.bf16.msra.mxu1 %v686_v3  ;;  %v747_v17 = vld [vmem:[%s884_s3 + $0x60] sm:$0xff]  ;;  %v766_v25 = vld [vmem:[%s884_s3 + $0x58] sm:$0xff]  ;;  %v626_v33 = vld [vmem:[%s884_s3 + $0x50] sm:$0xff] }
   0x8   :  { %370 = vmatpush.bf16.msra.mxu2 %v698_v5  ;;  %v118_v20 = vmul.f32 %v115_v13, %v115_v13  ;;  %v754_v21 = vld [vmem:[%s884_s3 + $0xa0] sm:$0xff]  ;;  %v119_v22 = vmul.f32 %v116_v18, %v116_v18  ;;  %v120_v23 = vmul.f32 %v117_v19, %v117_v19  ;;  %v777_v28 = vld [vmem:[%s884_s3 + $0x98] sm:$0xff]  ;;  %v801_v36 = vld [vmem:[%s884_s3 + $0x90] sm:$0xff] }
   0x9   :  { %v617_v38 = vld [vmem:[%s884_s3 + $0x8] sm:$0xff]  ;;  %v616_v43 = vld [vmem:[%s884_s3] sm:$0xff] }
   0xa   :  { %345 = vmatpush.bf16.msra.mxu0 %v704_v6  ;;  %395 = vmatpush.bf16.msra.mxu3 %v704_v6  ;;  %v768_v26 = vpack.c.bf16 %v119_v22, %v118_v20  ;;  %v770_v27 = vpack.c.bf16 %v120_v23, %v120_v23  ;;  %v625_v39 = vld [vmem:[%s884_s3 + $0x48] sm:$0xff]  ;;  %v624_v44 = vld [vmem:[%s884_s3 + $0x40] sm:$0xff] }
   0xb   :  { %358 = vmatpush.bf16.msra.mxu1 %v710_v7  ;;  %v819_v41 = vld [vmem:[%s884_s3 + $0x88] sm:$0xff]  ;;  %v835_v47 = vld [vmem:[%s884_s3 + $0x80] sm:$0xff] }
   0xc   :  { %371 = vmatpush.bf16.msra.mxu2 %v716_v8  ;;  %v171_v29 = vunpack.c.l.bf16 %v768_v26  ;;  %v172_v30 = vunpack.c.h.bf16 %v768_v26  ;;  %v173_v31 = vunpack.c.l.bf16 %v770_v27  ;;  %v384_v49 = vunpack.c.l.b16 %v768_v26 }
   0xd   :  { %v385_v56 = vunpack.c.h.b16 %v768_v26  ;;  %v386_v57 = vunpack.c.l.b16 %v770_v27  ;;  %v472_v27 = vld [vmem:[%s887_s2] sm:$0xff] }
   0xe   :  { %346 = vmatpush.bf16.msra.mxu0 %v741_v16  ;;  %396 = vmatpush.bf16.msra.mxu3 %v741_v16  ;;  %v792_v34 = vsub.f32 %v118_v20, %v171_v29  ;;  %v794_v35 = vsub.f32 %v119_v22, %v172_v30  ;;  %v803_v37 = vsub.f32 %v120_v23, %v173_v31 }
   0xf   :  { %359 = vmatpush.bf16.msra.mxu1 %v747_v17  ;;  %v387_v53 = vpack.c.b16 %v384_v49, %v384_v49  ;;  %v388_v60 = vpack.c.b16 %v385_v56, %v385_v56  ;;  %v389_v61 = vpack.c.b16 %v386_v57, %v386_v57 }
  0x10   :  { %372 = vmatpush.bf16.msra.mxu2 %v754_v21  ;;  %v177_v40 = vpack.c.bf16 %v794_v35, %v792_v34  ;;  %v823_v42 = vpack.c.bf16 %v803_v37, %v803_v37 }
  0x12   :  { %347 = vmatpush.bf16.msra.mxu0 %v760_v24  ;;  %397 = vmatpush.bf16.msra.mxu3 %v760_v24  ;;  %v190_v45 = vunpack.c.l.b16 %v177_v40  ;;  %v191_v46 = vunpack.c.h.b16 %v177_v40  ;;  %v192_v48 = vunpack.c.l.b16 %v823_v42  ;;  %v179_v54 = vunpack.c.l.bf16 %v177_v40 }
  0x13   :  { %360 = vmatpush.bf16.msra.mxu1 %v766_v25  ;;  %v180_v55 = vunpack.c.h.bf16 %v177_v40 }
  0x14   :  { %373 = vmatpush.bf16.msra.mxu2 %v777_v28  ;;  %v193_v50 = vpack.c.b16 %v190_v45, %v190_v45  ;;  %v194_v51 = vpack.c.b16 %v191_v46, %v191_v46  ;;  %v195_v52 = vpack.c.b16 %v192_v48, %v192_v48  ;;  %v182_v58 = vsub.f32 %v792_v34, %v179_v54 }
  0x15   :  { %v183_v59 = vsub.f32 %v794_v35, %v180_v55 }
  0x16   :  { %348 = vmatpush.bf16.msra.mxu0 %v786_v32  ;;  %398 = vmatpush.bf16.msra.mxu3 %v786_v32  ;;  %v185_v62 = vpack.c.bf16 %v182_v58, %v182_v58 }
  0x17   :  { %361 = vmatpush.bf16.msra.mxu1 %v626_v33  ;;  %v186_v63 = vpack.c.bf16 %v183_v59, %v183_v59 }
  0x18   :  { %374 = vmatpush.bf16.msra.mxu2 %v801_v36 }
  0x1a   :  { %349 = vmatpush.bf16.msra.mxu0 %v617_v38  ;;  %399 = vmatpush.bf16.msra.mxu3 %v617_v38 }
  0x1b   :  { %362 = vmatpush.bf16.msra.mxu1 %v625_v39 }
  0x1c   :  { %375 = vmatpush.bf16.msra.mxu2 %v819_v41 }
  0x1e   :  { %350 = vmatpush.bf16.msra.mxu0 %v616_v43  ;;  %400 = vmatpush.bf16.msra.mxu3 %v616_v43 }
  0x1f   :  { %363 = vmatpush.bf16.msra.mxu1 %v624_v44 }
  0x20   :  { %376 = vmatpush.bf16.msra.mxu2 %v835_v47 }
  0x21   :  { %351 = vmatmul.bf16.vlgmr.msra.gmra.mxu0 %v193_v50  ;;  %401 = vmatmul.bf16.vlgmr.msra.gmra.mxu3 %v387_v53 }
  0x22   :  { %406 = vmatpush.bf16.msrb.mxu0 %v674_v1  ;;  %445 = vmatpush.bf16.msrb.mxu3 %v674_v1 }
  0x23   :  { %419 = vmatpush.bf16.msrb.mxu1 %v691_v4  ;;  %377 = vmatmul.bf16.vlgmr.msra.gmra.mxu2 %v195_v52 }
  0x24   :  { %432 = vmatpush.bf16.msrb.mxu2 %v669_v0  ;;  %364 = vmatmul.bf16.vlgmr.msra.gmra.mxu1 %v194_v51  ;;  %v181_v0 = vunpack.c.l.bf16 %v823_v42 }
  0x26   :  { %407 = vmatpush.bf16.msrb.mxu0 %v686_v3  ;;  %446 = vmatpush.bf16.msrb.mxu3 %v686_v3  ;;  %v184_v1 = vsub.f32 %v803_v37, %v181_v0 }
  0x27   :  { %420 = vmatpush.bf16.msrb.mxu1 %v698_v5 }
  0x28   :  { %433 = vmatpush.bf16.msrb.mxu2 %v680_v2  ;;  %v187_v2 = vpack.c.bf16 %v184_v1, %v184_v1 }
  0x2a   :  { %408 = vmatpush.bf16.msrb.mxu0 %v710_v7  ;;  %447 = vmatpush.bf16.msrb.mxu3 %v710_v7 }
  0x2b   :  { %421 = vmatpush.bf16.msrb.mxu1 %v716_v8 }
  0x2c   :  { %434 = vmatpush.bf16.msrb.mxu2 %v704_v6 }
  0x2e   :  { %409 = vmatpush.bf16.msrb.mxu0 %v747_v17  ;;  %448 = vmatpush.bf16.msrb.mxu3 %v747_v17 }
  0x2f   :  { %422 = vmatpush.bf16.msrb.mxu1 %v754_v21 }
  0x30   :  { %435 = vmatpush.bf16.msrb.mxu2 %v741_v16 }
  0x32   :  { %410 = vmatpush.bf16.msrb.mxu0 %v766_v25  ;;  %449 = vmatpush.bf16.msrb.mxu3 %v766_v25 }
  0x33   :  { %423 = vmatpush.bf16.msrb.mxu1 %v777_v28 }
  0x34   :  { %436 = vmatpush.bf16.msrb.mxu2 %v760_v24 }
  0x36   :  { %411 = vmatpush.bf16.msrb.mxu0 %v626_v33  ;;  %450 = vmatpush.bf16.msrb.mxu3 %v626_v33 }
  0x37   :  { %424 = vmatpush.bf16.msrb.mxu1 %v801_v36 }
  0x38   :  { %437 = vmatpush.bf16.msrb.mxu2 %v786_v32 }
  0x3a   :  { %412 = vmatpush.bf16.msrb.mxu0 %v625_v39  ;;  %451 = vmatpush.bf16.msrb.mxu3 %v625_v39 }
  0x3b   :  { %425 = vmatpush.bf16.msrb.mxu1 %v819_v41 }
  0x3c   :  { %438 = vmatpush.bf16.msrb.mxu2 %v617_v38 }
  0x3e   :  { %413 = vmatpush.bf16.msrb.mxu0 %v624_v44  ;;  %452 = vmatpush.bf16.msrb.mxu3 %v624_v44 }
  0x3f   :  { %426 = vmatpush.bf16.msrb.mxu1 %v835_v47 }
  0x40   :  { %439 = vmatpush.bf16.msrb.mxu2 %v616_v43 }
  0x41   :  { %414 = vmatmul.bf16.vlgmr.msrb.gmra.mxu0 %v388_v60  ;;  %453 = vmatmul.bf16.vlgmr.msrb.gmra.mxu3 %v186_v63 }
  0x42   :  { %458 = vmatpush.bf16.msra.mxu0 %v691_v4  ;;  %427 = vmatmul.bf16.vlgmr.msrb.gmra.mxu1 %v389_v61 }
  0x43   :  { %440 = vmatmul.bf16.vlgmr.msrb.gmra.mxu2 %v185_v62 }
  0x46   :  { %459 = vmatpush.bf16.msra.mxu0 %v698_v5 }
  0x4a   :  { %460 = vmatpush.bf16.msra.mxu0 %v716_v8 }
  0x4e   :  { %461 = vmatpush.bf16.msra.mxu0 %v754_v21 }
  0x52   :  { %462 = vmatpush.bf16.msra.mxu0 %v777_v28 }
  0x56   :  { %463 = vmatpush.bf16.msra.mxu0 %v801_v36 }
  0x5a   :  { %464 = vmatpush.bf16.msra.mxu0 %v819_v41 }
  0x5e   :  { %465 = vmatpush.bf16.msra.mxu0 %v835_v47 }
  0x61   :  { %466 = vmatmul.bf16.vlgmr.msra.gmra.mxu0 %v187_v2 }
  0x9e   :  { %v352_v3 = vpop.f32.mrf.mxu0 }
  0xa1   :  { %v365_v4 = vpop.f32.mrf.mxu1 }
  0xa2   :  { %v366_v17 = vadd.f32 %v365_v4, %v352_v3 }
  0xa4   :  { %v402_v8 = vpop.f32.mrf.mxu3 }
  0xa6   :  { %v354_v5 = vpop.f32.mrf.mxu0  ;;  %v378_v7 = vpop.f32.mrf.mxu2 }
  0xa7   :  { %v379_v20 = vadd.f32 %v378_v7, %v366_v17 }
  0xa9   :  { %v367_v6 = vpop.f32.mrf.mxu1  ;;  %v403_v21 = vadd.f32 %v402_v8, %v379_v20 }
  0xac   :  { %v404_v10 = vpop.f32.mrf.mxu3 }
  0xae   :  { %v380_v9 = vpop.f32.mrf.mxu2 }
  0xbe   :  { %v415_v11 = vpop.f32.mrf.mxu0 }
  0xbf   :  { %v428_v12 = vpop.f32.mrf.mxu1  ;;  %v416_v22 = vadd.f32 %v415_v11, %v403_v21 }
  0xc1   :  { %v429_v25 = vadd.f32 %v428_v12, %v416_v22 }
  0xc4   :  { %v454_v15 = vpop.f32.mrf.mxu3 }
  0xc6   :  { %v417_v13 = vpop.f32.mrf.mxu0  ;;  %v441_v14 = vpop.f32.mrf.mxu2 }
  0xc7   :  { %v430_v16 = vpop.f32.mrf.mxu1  ;;  %v455_v23 = vadd.f32 %v454_v15, %v441_v14 }
  0xcc   :  { %v456_v19 = vpop.f32.mrf.mxu3 }
  0xce   :  { %v443_v18 = vpop.f32.mrf.mxu2 }
  0xde   :  { %v467_v24 = vpop.f32.mrf.mxu0 }
  0xdf   :  { %v468_v26 = vadd.f32 %v467_v24, %v455_v23 }
  0xe1   :  { %v471_v28 = vadd.f32 %v468_v26, %v429_v25 }
  0xe3   :  { %v473_v29 = vmul.f32 %v472_v27, %v471_v28 }
  0xe5   :  { %484 = vst [vmem:[%s888_s4] sm:$0xff] %v473_v29 }
  0xe6   :  { %v469_v30 = vpop.f32.mrf.mxu0 }

</bundles_post_ra>
